<compile_context>
chip_gen: v7x
topology: tpu7x:2x2x1
jax: 0.10.0
libtpu: 0.0.40
codegen_flags: <defaults>
</compile_context>

<pallas_src>
import functools

import jax
import jax.numpy as jnp
from jax.experimental import pallas as pl
from jax.experimental.pallas import tpu as pltpu


_MAX_EDGE_TILE = 8192                  # keeps per-step temporaries / unroll bounded
_VMEM_GATHER_UNSUPPORTED = set()       # (n_pad, H, et) keys whose in-kernel gather failed


def _round_up(x, m):
    return (x + m - 1) // m * m


def _vmem_limit_bytes():
    """Generation-aware scoped-VMEM limit: half of physical VMEM, capped at 64 MiB.

    v5e/v6e (128 MiB physical) -> 64 MiB, v7x (64 MiB physical) -> 32 MiB.
    """
    cap = 0
    try:
        cap = int(getattr(pltpu.get_tpu_info(), "vmem_capacity_bytes", 0) or 0)
    except Exception:
        cap = 0
    if cap <= 0:
        cap = 64 * 1024 * 1024          # conservative default (v7x-sized)
    return min(cap // 2, 64 * 1024 * 1024)


def _compiler_params(vmem_limit):
    return pltpu.CompilerParams(
        dimension_semantics=("parallel",),
        vmem_limit_bytes=int(vmem_limit),
    )


# --------------------------------------------------------------------------
# Kernels
# --------------------------------------------------------------------------

def _decode_tile(src, dst, w1a, w1b, b1, w2, b2, out_ref):
    """Shared epilogue: src/dst are [TE, H] gathered embeddings (already in VMEM)."""
    # lin1 on the two concat halves (the [TE, 2H] concat is never materialized).
    h = (jnp.dot(src, w1a, preferred_element_type=jnp.float32)
         + jnp.dot(dst, w1b, preferred_element_type=jnp.float32)
         + b1.astype(jnp.float32))
    h = jnp.maximum(h, 0.0)                                     # ReLU
    # lin2 as VPU broadcast-multiply + lane reduction; an N=1 MXU matmul would
    # use 1/128 (v5e) or 1/256 (v6e/v7x) of the MXU output columns.
    s = jnp.sum(h * w2.astype(jnp.float32), axis=-1) + b2
    out_ref[0, :] = s.astype(out_ref.dtype)                     # lane-dense row


def _gather_decode_kernel(src_idx_ref, dst_idx_ref, node_ref, w1a_ref, w1b_ref,
                          b1_ref, w2_ref, b2_ref, out_ref):
    # src_idx_ref/dst_idx_ref: [1, TE] int32 index rows (streamed per tile)
    # node_ref:                [N_pad, H] node table (grid-invariant, VMEM-resident)
    # w1a_ref/w1b_ref:         [H, H] halves of lin1.weight^T
    # b1_ref/w2_ref:           [1, H]; b2_ref: [1, 1] scalar in SMEM
    node = node_ref[...]
    src = jnp.take(node, src_idx_ref[0, :], axis=0, mode="clip")
    dst = jnp.take(node, dst_idx_ref[0, :], axis=0, mode="clip")
    _decode_tile(src, dst, w1a_ref[...], w1b_ref[...], b1_ref[...],
                 w2_ref[...], b2_ref[0, 0], out_ref)


def _stream_decode_kernel(src_ref, dst_ref, w1a_ref, w1b_ref,
                          b1_ref, w2_ref, b2_ref, out_ref):
    # src_ref/dst_ref: [TE, H] pre-gathered embedding tiles (streamed from HBM)
    _decode_tile(src_ref[...], dst_ref[...], w1a_ref[...], w1b_ref[...],
                 b1_ref[...], w2_ref[...], b2_ref[0, 0], out_ref)


# --------------------------------------------------------------------------
# Jitted implementations (one per gather strategy)
# --------------------------------------------------------------------------

@functools.partial(jax.jit, static_argnames=("edge_tile", "vmem_limit"))
def _forward_vmem_gather(node_emb, edge_index, w1a, w1b, b1, w2, b2,
                         *, edge_tile, vmem_limit):
    """Primary path: node table resident in VMEM, row gather done in-kernel."""
    num_nodes, hidden = node_emb.shape
    num_edges = edge_index.shape[1]
    et = edge_tile
    padded_e = _round_up(num_edges, et)
    num_tiles = padded_e // et

    n_pad = _round_up(num_nodes, 8)
    if n_pad != num_nodes:
        node_emb = jnp.pad(node_emb, ((0, n_pad - num_nodes), (0, 0)))

    idx = edge_index.astype(jnp.int32)
    if padded_e != num_edges:
        idx = jnp.pad(idx, ((0, 0), (0, padded_e - num_edges)))   # pad -> node 0 (valid)
    src_idx = idx[0].reshape(num_tiles, et)
    dst_idx = idx[1].reshape(num_tiles, et)

    out = pl.pallas_call(
        _gather_decode_kernel,
        out_shape=jax.ShapeDtypeStruct((num_tiles, et), node_emb.dtype),
        grid_spec=pltpu.PrefetchScalarGridSpec(
            num_scalar_prefetch=0,
            grid=(num_tiles,),
            in_specs=[
                pl.BlockSpec((1, et), lambda i: (i, 0)),            # src ids (streamed)
                pl.BlockSpec((1, et), lambda i: (i, 0)),            # dst ids (streamed)
                pl.BlockSpec((n_pad, hidden), lambda i: (0, 0)),    # node table (invariant)
                pl.BlockSpec((hidden, hidden), lambda i: (0, 0)),   # w1a
                pl.BlockSpec((hidden, hidden), lambda i: (0, 0)),   # w1b
                pl.BlockSpec((1, hidden), lambda i: (0, 0)),        # b1
                pl.BlockSpec((1, hidden), lambda i: (0, 0)),        # w2 row
                pl.BlockSpec(memory_space=pltpu.MemorySpace.SMEM),  # b2 scalar
            ],
            out_specs=pl.BlockSpec((1, et), lambda i: (i, 0)),      # lane-dense row
        ),
        compiler_params=_compiler_params(vmem_limit),
    )(src_idx, dst_idx, node_emb, w1a, w1b, b1, w2, b2)
    return out.reshape(-1)[:num_edges]


@functools.partial(jax.jit, static_argnames=("edge_tile", "vmem_limit"))
def _forward_streamed(node_emb, edge_index, w1a, w1b, b1, w2, b2,
                      *, edge_tile, vmem_limit):
    """Fallback path: XLA row gather in HBM, gathered [E, H] tiles streamed in."""
    hidden = node_emb.shape[1]
    num_edges = edge_index.shape[1]
    et = edge_tile
    padded_e = _round_up(num_edges, et)
    num_tiles = padded_e // et

    idx = edge_index.astype(jnp.int32)
    if padded_e != num_edges:
        idx = jnp.pad(idx, ((0, 0), (0, padded_e - num_edges)))   # pad -> node 0 (valid)
    src_emb = node_emb[idx[0]]                                    # [padded_e, H]
    dst_emb = node_emb[idx[1]]                                    # [padded_e, H]

    out = pl.pallas_call(
        _stream_decode_kernel,
        out_shape=jax.ShapeDtypeStruct((num_tiles, et), node_emb.dtype),
        grid_spec=pltpu.PrefetchScalarGridSpec(
            num_scalar_prefetch=0,
            grid=(num_tiles,),
            in_specs=[
                pl.BlockSpec((et, hidden), lambda i: (i, 0)),       # src tile (streamed)
                pl.BlockSpec((et, hidden), lambda i: (i, 0)),       # dst tile (streamed)
                pl.BlockSpec((hidden, hidden), lambda i: (0, 0)),   # w1a
                pl.BlockSpec((hidden, hidden), lambda i: (0, 0)),   # w1b
                pl.BlockSpec((1, hidden), lambda i: (0, 0)),        # b1
                pl.BlockSpec((1, hidden), lambda i: (0, 0)),        # w2 row
                pl.BlockSpec(memory_space=pltpu.MemorySpace.SMEM),  # b2 scalar
            ],
            out_specs=pl.BlockSpec((1, et), lambda i: (i, 0)),      # lane-dense row
        ),
        compiler_params=_compiler_params(vmem_limit),
    )(src_emb, dst_emb, w1a, w1b, b1, w2, b2)
    return out.reshape(-1)[:num_edges]


# --------------------------------------------------------------------------
# Public API
# --------------------------------------------------------------------------

def prepare_params(params):
    """One-time weight prep (hoisted out of the forward path)."""
    w1, b1, w2, b2 = params["w1"], params["b1"], params["w2"], params["b2"]
    hidden = b1.shape[0]
    assert w1.shape == (hidden, 2 * hidden) and w2.shape == (1, hidden)
    w1_t = jnp.asarray(w1).T                         # [2H, H]
    return {
        "w1a": w1_t[:hidden, :],                     # acts on the src half
        "w1b": w1_t[hidden:, :],                     # acts on the dst half
        "b1": jnp.asarray(b1).reshape(1, hidden),
        "w2": jnp.asarray(w2).reshape(1, hidden),
        "b2": jnp.asarray(b2).reshape(1, 1),
    }


def edge_decoder_forward(node_embeddings, edge_weights_index, prepared,
                         *, edge_tile=None, stream_dtype=None):
    """Pallas implementation of EdgeDecoder.forward (prepared = prepare_params(...)).

    Call this wrapper un-jitted: it does host-side tile/path selection (and can
    fall back if the in-kernel row gather is unsupported by the installed
    jax/libtpu); the Pallas paths themselves are jitted internally.
    `stream_dtype` (e.g. jnp.bfloat16) optionally halves streamed HBM bytes at a
    small numerical delta vs the f32 reference; the output follows that dtype.
    """
    num_nodes, hidden = node_embeddings.shape
    num_edges = edge_weights_index.shape[1]
    if num_edges == 0:
        return jnp.zeros((0,), node_embeddings.dtype)

    w1a, w1b = prepared["w1a"], prepared["w1b"]
    b1, w2, b2 = prepared["b1"], prepared["w2"], prepared["b2"]
    if stream_dtype is not None:
        node_embeddings = node_embeddings.astype(stream_dtype)
        w1a = w1a.astype(stream_dtype)
        w1b = w1b.astype(stream_dtype)

    vmem_limit = _vmem_limit_bytes()
    itemsize = jnp.dtype(node_embeddings.dtype).itemsize
    margin = 2 * 1024 * 1024
    # Grid-invariant inputs are still double-buffered by the pipeline (VMEM-only
    # cost, no extra HBM traffic); account for the 2x here instead of relying on
    # pl.Buffered(1).  Material only for very large H.
    weight_bytes = 2 * (2 * hidden * hidden * itemsize + 2 * hidden * 4)

    def pick_tile(budget, per_row_bytes):
        if edge_tile is not None:
            et = max(128, _round_up(int(edge_tile), 128))
        else:
            # Let the VMEM budget grow the tile (no fixed 512-row cap).
            et = max(128, (max(budget, 0) // per_row_bytes) // 128 * 128)
        et = min(et, _MAX_EDGE_TILE, _round_up(num_edges, 128))
        if num_edges > 128:
            # Keep >= 2 parallel tiles so v7x's second TensorCore gets work
            # (one extra ~0.35us grid step is negligible on 1-TC v5e/v6e).
            et = min(et, _round_up((num_edges + 1) // 2, 128))
        return max(128, et)

    # ---- preferred path: node table resident in VMEM, row gather in-kernel ----
    n_pad = _round_up(num_nodes, 8)
    table_bytes = 2 * n_pad * hidden * itemsize                  # double-buffered
    budget_g = vmem_limit - table_bytes - weight_bytes - margin
    per_row_g = 2 * 2 * 4 + 4 * hidden * 4 + 2 * 4               # idx streams + temps + out
    if budget_g >= per_row_g * 128:
        et = pick_tile(budget_g, per_row_g)
        key = (n_pad, hidden, et)
        if key not in _VMEM_GATHER_UNSUPPORTED:
            try:
                return _forward_vmem_gather(node_embeddings, edge_weights_index,
                                            w1a, w1b, b1, w2, b2,
                                            edge_tile=et, vmem_limit=vmem_limit)
            except Exception:
                # jnp.take row-gather did not lower on this jax/libtpu version;
                # fall back to streaming the XLA-gathered rows.
                _VMEM_GATHER_UNSUPPORTED.add(key)

    # ---- fallback: XLA row gather in HBM + streamed [E, H] tiles ----
    per_row_s = 2 * 2 * hidden * itemsize + 3 * hidden * 4 + 2 * 4
    budget_s = vmem_limit - weight_bytes - margin
    et = pick_tile(budget_s, per_row_s)
    return _forward_streamed(node_embeddings, edge_weights_index,
                             w1a, w1b, b1, w2, b2,
                             edge_tile=et, vmem_limit=vmem_limit)


def init_params(key, hidden_size):
    """Deterministic init matching PyTorch Linear shapes (uniform +/- 1/sqrt(fan_in))."""
    k1, k2, k3, k4 = jax.random.split(key, 4)
    bound1 = 1.0 / jnp.sqrt(2 * hidden_size)
    bound2 = 1.0 / jnp.sqrt(hidden_size)
    return {
        "w1": jax.random.uniform(k1, (hidden_size, 2 * hidden_size),
                                 jnp.float32, -bound1, bound1),
        "b1": jax.random.uniform(k2, (hidden_size,), jnp.float32, -bound1, bound1),
        "w2": jax.random.uniform(k3, (1, hidden_size), jnp.float32, -bound2, bound2),
        "b2": jax.random.uniform(k4, (1,), jnp.float32, -bound2, bound2),
    }


def _reference_forward(node_embeddings, edge_weights_index, params):
    src = edge_weights_index[0, :]
    dst = edge_weights_index[1, :]
    edge_emb = jnp.concatenate(
        [node_embeddings[src], node_embeddings[dst]], axis=1)    # [E, 2H]
    h = edge_emb @ params["w1"].T + params["b1"]
    h = jnp.maximum(h, 0.0)
    h = h @ params["w2"].T + params["b2"]
    return h.reshape(-1)


if __name__ == "__main__":
    key = jax.random.PRNGKey(0)
    k_params = jax.random.fold_in(key, 0)
    hidden_size = 32
    params = init_params(k_params, hidden_size)
    prepared = prepare_params(params)              # one-time weight prep

    # Case 1: tiny (single tile).  Case 2: multi-tile with a padded tail,
    # exercising the >=2-parallel-tiles path used for v7x.
    cases = [(12, 16), (200, 300)]                 # (num_nodes, num_edges)
    for case_i, (num_nodes, num_edges) in enumerate(cases):
        k_emb = jax.random.fold_in(key, 10 + case_i)
        k_edge = jax.random.fold_in(key, 20 + case_i)
        node_embeddings = jax.random.normal(k_emb, (num_nodes, hidden_size),
                                            dtype=jnp.float32)
        edge_weights_index = jax.random.randint(k_edge, (2, num_edges),
                                                0, num_nodes, dtype=jnp.int32)

        out = jax.block_until_ready(
            edge_decoder_forward(node_embeddings, edge_weights_index, prepared))
        ref = _reference_forward(node_embeddings, edge_weights_index, params)

        assert out.shape == (num_edges,), (out.shape, num_edges)
        assert jnp.allclose(out, ref, atol=1e-5, rtol=1e-4), (
            case_i, jnp.max(jnp.abs(out - ref)))

    print("KERNEL_OK")
</pallas_src>

<mosaic_0001>
module attributes {stable_mosaic.version = 11 : i64} {
  func.func @_stream_decode_kernel(%arg0: i32, %arg1: memref<128x32xf32, #tpu.memory_space<vmem>>, %arg2: memref<128x32xf32, #tpu.memory_space<vmem>>, %arg3: memref<32x32xf32, #tpu.memory_space<vmem>>, %arg4: memref<32x32xf32, #tpu.memory_space<vmem>>, %arg5: memref<1x32xf32, #tpu.memory_space<vmem>>, %arg6: memref<1x32xf32, #tpu.memory_space<vmem>>, %arg7: memref<1x1xf32, #tpu.memory_space<smem>>, %arg8: memref<1x128xf32, #tpu.memory_space<vmem>>) attributes {dimension_semantics = [#tpu.dimension_semantics<parallel>], iteration_bounds = array<i64: 1>, scalar_prefetch = 0 : i64, scratch_operands = 0 : i64, tpu.core_type = #tpu.core_type<tc>, window_params = [{transform_indices = @transform_0, window_bounds = array<i64: 128, 32>}, {transform_indices = @transform_1, window_bounds = array<i64: 128, 32>}, {pipeline_mode = #tpu.pipeline_mode<synchronous>, transform_indices = @transform_2, window_bounds = array<i64: 32, 32>}, {pipeline_mode = #tpu.pipeline_mode<synchronous>, transform_indices = @transform_3, window_bounds = array<i64: 32, 32>}, {pipeline_mode = #tpu.pipeline_mode<synchronous>, transform_indices = @transform_4, window_bounds = array<i64: 1, 32>}, {pipeline_mode = #tpu.pipeline_mode<synchronous>, transform_indices = @transform_5, window_bounds = array<i64: 1, 32>}, {transform_indices = @transform_6, window_bounds = array<i64: 1, 1>}, {transform_indices = @transform_7, window_bounds = array<i64: 1, 128>}]} {
    %c0 = arith.constant 0 : index
    %c0_0 = arith.constant 0 : index
    %0 = vector.load %arg1[%c0, %c0_0] : memref<128x32xf32, #tpu.memory_space<vmem>>, vector<128x32xf32>
    %c0_1 = arith.constant 0 : index
    %c0_2 = arith.constant 0 : index
    %1 = vector.load %arg2[%c0_1, %c0_2] : memref<128x32xf32, #tpu.memory_space<vmem>>, vector<128x32xf32>
    %c0_3 = arith.constant 0 : index
    %c0_4 = arith.constant 0 : index
    %2 = vector.load %arg3[%c0_3, %c0_4] : memref<32x32xf32, #tpu.memory_space<vmem>>, vector<32x32xf32>
    %c0_5 = arith.constant 0 : index
    %c0_6 = arith.constant 0 : index
    %3 = vector.load %arg4[%c0_5, %c0_6] : memref<32x32xf32, #tpu.memory_space<vmem>>, vector<32x32xf32>
    %c0_7 = arith.constant 0 : index
    %c0_8 = arith.constant 0 : index
    %4 = vector.load %arg5[%c0_7, %c0_8] : memref<1x32xf32, #tpu.memory_space<vmem>>, vector<1x32xf32>
    %c0_9 = arith.constant 0 : index
    %c0_10 = arith.constant 0 : index
    %5 = vector.load %arg6[%c0_9, %c0_10] : memref<1x32xf32, #tpu.memory_space<vmem>>, vector<1x32xf32>
    %c0_11 = arith.constant 0 : index
    %c0_12 = arith.constant 0 : index
    %6 = memref.load %arg7[%c0_11, %c0_12] : memref<1x1xf32, #tpu.memory_space<smem>>
    %cst = arith.constant dense<0.000000e+00> : vector<128x32xf32>
    %7 = tpu.matmul %0, %2, %cst {dimension_numbers = #tpu.dot_dimension_numbers<[1], [0], [0], [1], [0, 0, 1, 1], [], []>} : vector<128x32xf32>, vector<32x32xf32>, vector<128x32xf32> -> vector<128x32xf32>
    %cst_13 = arith.constant dense<0.000000e+00> : vector<128x32xf32>
    %8 = tpu.matmul %1, %3, %cst_13 {dimension_numbers = #tpu.dot_dimension_numbers<[1], [0], [0], [1], [0, 0, 1, 1], [], []>} : vector<128x32xf32>, vector<32x32xf32>, vector<128x32xf32> -> vector<128x32xf32>
    %9 = arith.addf %7, %8 : vector<128x32xf32>
    %10 = vector.broadcast %4 : vector<1x32xf32> to vector<128x32xf32>
    %11 = arith.addf %9, %10 : vector<128x32xf32>
    %cst_14 = arith.constant 0.000000e+00 : f32
    %12 = vector.broadcast %cst_14 : f32 to vector<128x32xf32>
    %13 = arith.maximumf %11, %12 : vector<128x32xf32>
    %14 = vector.broadcast %5 : vector<1x32xf32> to vector<128x32xf32>
    %15 = arith.mulf %13, %14 : vector<128x32xf32>
    %cst_15 = arith.constant dense<0.000000e+00> : vector<128xf32>
    %16 = vector.multi_reduction <add>, %15, %cst_15 [1] : vector<128x32xf32> to vector<128xf32>
    %17 = vector.broadcast %6 : f32 to vector<128xf32>
    %18 = arith.addf %16, %17 : vector<128xf32>
    %c0_16 = arith.constant 0 : index
    %c0_17 = arith.constant 0 : index
    %19 = vector.load %arg8[%c0_16, %c0_17] : memref<1x128xf32, #tpu.memory_space<vmem>>, vector<1x128xf32>
    %20 = vector.shape_cast %19 : vector<1x128xf32> to vector<128xf32>
    %21 = vector.shape_cast %18 : vector<128xf32> to vector<1x128xf32>
    tpu.vector_store %arg8[%c0_16, %c0_17], %21 {strides = array<i32>} : memref<1x128xf32, #tpu.memory_space<vmem>>, vector<1x128xf32>,
    return
  }
  func.func @transform_0(%arg0: i32) -> (i32, i32) {
    %c0_i32 = arith.constant 0 : i32
    %c0_i32_0 = arith.constant 0 : i32
    return %arg0, %c0_i32 : i32, i32
  }
  func.func @transform_1(%arg0: i32) -> (i32, i32) {
    %c0_i32 = arith.constant 0 : i32
    %c0_i32_0 = arith.constant 0 : i32
    return %arg0, %c0_i32 : i32, i32
  }
  func.func @transform_2(%arg0: i32) -> (i32, i32) {
    %c0_i32 = arith.constant 0 : i32
    %c0_i32_0 = arith.constant 0 : i32
    %c0_i32_1 = arith.constant 0 : i32
    return %c0_i32, %c0_i32_0 : i32, i32
  }
  func.func @transform_3(%arg0: i32) -> (i32, i32) {
    %c0_i32 = arith.constant 0 : i32
    %c0_i32_0 = arith.constant 0 : i32
    %c0_i32_1 = arith.constant 0 : i32
    return %c0_i32, %c0_i32_0 : i32, i32
  }
  func.func @transform_4(%arg0: i32) -> (i32, i32) {
    %c0_i32 = arith.constant 0 : i32
    %c0_i32_0 = arith.constant 0 : i32
    %c0_i32_1 = arith.constant 0 : i32
    return %c0_i32, %c0_i32_0 : i32, i32
  }
  func.func @transform_5(%arg0: i32) -> (i32, i32) {
    %c0_i32 = arith.constant 0 : i32
    %c0_i32_0 = arith.constant 0 : i32
    %c0_i32_1 = arith.constant 0 : i32
    return %c0_i32, %c0_i32_0 : i32, i32
  }
  func.func @transform_6(%arg0: i32) -> (i32, i32) {
    %c0_i32 = arith.constant 0 : i32
    %c0_i32_0 = arith.constant 0 : i32
    %c0_i32_1 = arith.constant 0 : i32
    return %c0_i32, %c0_i32_0 : i32, i32
  }
  func.func @transform_7(%arg0: i32) -> (i32, i32) {
    %c0_i32 = arith.constant 0 : i32
    %c0_i32_0 = arith.constant 0 : i32
    return %arg0, %c0_i32 : i32, i32
  }
}

</mosaic_0001>

<bundles_post_ra>
// kernel: _forward_streamed.1
= control target key start
LH: loop header
LB: loop body
LE: loop exit
PB: predicated region body
PF: predicated region fallthrough
CT: control target
= control target key end

     0   :  { %vm70_vm0 = vcmask 261120   ;;  %vm609_vm1 = vcmask 130112   ;;  %vm616_vm2 = vcmask 195712   ;;  %vm623_vm3 = vcmask 261312   ;;  %s1196_s3 = inlined_call_operand.vmem [shape: f32[32,32], index: 3, kind: input, shape index: {}]   ;;  %s1197_s2 = inlined_call_operand.vmem [shape: f32[32,32], index: 2, kind: input, shape index: {}]   ;;  %s1198_s1 = inlined_call_operand.vmem [shape: f32[128,32], index: 1, kind: input, shape index: {}]   ;;  %s1199_s0 = inlined_call_operand.vmem [shape: f32[128,32], index: 0, kind: input, shape index: {}]   ;;  %s1200_s4 = inlined_call_operand.vmem [shape: f32[1,32], index: 4, kind: input, shape index: {}]   ;;  %s1201_s5 = inlined_call_operand.vmem [shape: f32[1,32], index: 5, kind: input, shape index: {}]   ;;  %s1202_s6 = inlined_call_operand.<no memory space> [shape: f32[1,1], index: 6, kind: input, shape index: {}]   ;;  %s1203_s7 = inlined_call_operand.vmem [shape: f32[1,128], index: 7, kind: output, shape index: {}]  }
   0x1   :  { %v63_v0 = vld [vmem:[%s1196_s3] sm:$0xff]  ;;  %v64_v1 = vld [vmem:[%s1196_s3 + $0x8] sm:$0xff]  ;;  %v65_v5 = vld [vmem:[%s1196_s3 + $0x10] sm:$0xff]  ;;  %vm630_vm4 = vcmask 326912   ;;  %vm637_vm5 = vcmask 392512   ;;  %vm644_vm6 = vcmask 458112  }
   0x2   :  { %v59_v2 = vld [vmem:[%s1197_s2] sm:$0xff]  ;;  %v853_v3 = vpack.c.bf16 %v64_v1, %v63_v0  ;;  %v60_v4 = vld [vmem:[%s1197_s2 + $0x8] sm:$0xff]  ;;  %v66_v6 = vld [vmem:[%s1196_s3 + $0x18] sm:$0xff]  ;;  %vm651_vm7 = vcmask 523712   ;;  %vm658_vm8 = vcmask 589312   ;;  %vm665_vm9 = vcmask 654912  }
   0x3   :  { %v861_v7 = vpack.c.bf16 %v60_v4, %v59_v2  ;;  %v857_v8 = vpack.c.bf16 %v66_v6, %v65_v5  ;;  %v61_v9 = vld [vmem:[%s1197_s2 + $0x10] sm:$0xff]  ;;  %v62_v10 = vld [vmem:[%s1197_s2 + $0x18] sm:$0xff]  ;;  %v43_v11 = vld [vmem:[%s1198_s1] sm:$0xff]  ;;  %vm672_vm10 = vcmask 720512   ;;  %vm679_vm11 = vcmask 786112  }
   0x4   :  { %854 = vmatprep.subr.bf16.mxu1 %v853_v3  ;;  %v865_v12 = vpack.c.bf16 %v62_v10, %v61_v9  ;;  %797 = vmatprep.mubr.msk.f32.mxu1 %vm70_vm0, %v43_v11  ;;  %v27_v13 = vld [vmem:[%s1199_s0] sm:$0xff]  ;;  %v44_v14 = vld [vmem:[%s1198_s1 + $0x8] sm:$0xff]  ;;  %v45_v16 = vld [vmem:[%s1198_s1 + $0x10] sm:$0xff]  ;;  %vm686_vm12 = vcmask 851712   ;;  %vm693_vm13 = vcmask 917312   ;;  %vm700_vm14 = vcmask 982912  }
   0x5   :  { %862 = vmatprep.subr.bf16.mxu0 %v861_v7  ;;  %856 = vmatpush3.bf16.msra.mxu1 %v853_v3  ;;  %v28_v15 = vld [vmem:[%s1199_s0 + $0x8] sm:$0xff]  ;;  %v29_v17 = vld [vmem:[%s1199_s0 + $0x10] sm:$0xff]  ;;  %v46_v18 = vld [vmem:[%s1198_s1 + $0x18] sm:$0xff]  ;;  %vm707_vm15 = vcmask 1048512  }
   0x6   :  { %864 = vmatpush3.bf16.msra.mxu0 %v861_v7  ;;  %858 = vmatprep.subr.bf16.mxu1 %v857_v8  ;;  %v30_v19 = vld [vmem:[%s1199_s0 + $0x18] sm:$0xff]  ;;  %v47_v20 = vld [vmem:[%s1198_s1 + $0x20] sm:$0xff]  ;;  %v48_v22 = vld [vmem:[%s1198_s1 + $0x28] sm:$0xff] }
   0x7   :  { %866 = vmatprep.subr.bf16.mxu0 %v865_v12  ;;  %829 = vmatprep.mubr.msk.f32.mxu0 %vm70_vm0, %v27_v13  ;;  %v31_v21 = vld [vmem:[%s1199_s0 + $0x20] sm:$0xff]  ;;  %v32_v23 = vld [vmem:[%s1199_s0 + $0x28] sm:$0xff]  ;;  %v49_v24 = vld [vmem:[%s1198_s1 + $0x30] sm:$0xff] }
   0x8   :  { %v33_v25 = vld [vmem:[%s1199_s0 + $0x30] sm:$0xff]  ;;  %v50_v26 = vld [vmem:[%s1198_s1 + $0x38] sm:$0xff]  ;;  %v51_v28 = vld [vmem:[%s1198_s1 + $0x40] sm:$0xff] }
   0x9   :  { %860 = vmatpush3.bf16.msra.mxu1 %v857_v8  ;;  %v34_v27 = vld [vmem:[%s1199_s0 + $0x38] sm:$0xff]  ;;  %v35_v29 = vld [vmem:[%s1199_s0 + $0x40] sm:$0xff]  ;;  %v52_v30 = vld [vmem:[%s1198_s1 + $0x48] sm:$0xff] }
   0xa   :  { %868 = vmatpush3.bf16.msra.mxu0 %v865_v12  ;;  %v36_v31 = vld [vmem:[%s1199_s0 + $0x48] sm:$0xff]  ;;  %v53_v32 = vld [vmem:[%s1198_s1 + $0x50] sm:$0xff]  ;;  %v54_v34 = vld [vmem:[%s1198_s1 + $0x58] sm:$0xff] }
   0xb   :  { %v37_v33 = vld [vmem:[%s1199_s0 + $0x50] sm:$0xff]  ;;  %v38_v35 = vld [vmem:[%s1199_s0 + $0x58] sm:$0xff]  ;;  %v55_v36 = vld [vmem:[%s1198_s1 + $0x60] sm:$0xff] }
   0xc   :  { %798 = vmatmul.mubr.msk.f32.vlgmr.msra.gmra.mrb[0].mxu1 %vm70_vm0, %v44_v14  ;;  %v39_v37 = vld [vmem:[%s1199_s0 + $0x60] sm:$0xff]  ;;  %v56_v38 = vld [vmem:[%s1198_s1 + $0x68] sm:$0xff]  ;;  %v57_v40 = vld [vmem:[%s1198_s1 + $0x70] sm:$0xff] }
   0xd   :  { %830 = vmatmul.mubr.msk.f32.vlgmr.msra.gmra.mrb[0].mxu0 %vm70_vm0, %v28_v15  ;;  %800 = vmatprep.mubr.msk.f32.mxu1 %vm70_vm0, %v45_v16  ;;  %v40_v39 = vld [vmem:[%s1199_s0 + $0x68] sm:$0xff]  ;;  %v41_v41 = vld [vmem:[%s1199_s0 + $0x70] sm:$0xff]  ;;  %v58_v42 = vld [vmem:[%s1198_s1 + $0x78] sm:$0xff] }
   0xe   :  { %832 = vmatprep.mubr.msk.f32.mxu0 %vm70_vm0, %v29_v17  ;;  %v42_v43 = vld [vmem:[%s1199_s0 + $0x78] sm:$0xff]  ;;  %v1080_v45 = vld [vmem:[%s1200_s4] ss:$0 sm:$0xff] }
   0xf   :  { %v1087_v56 = vld [vmem:[%s1201_s5] ss:$0 sm:$0xff] }
  0x10   :  { %801 = vmatmul.mubr.msk.f32.gmra.mrb[2].mxu1 %vm70_vm0, %v46_v18 }
  0x11   :  { %833 = vmatmul.mubr.msk.f32.gmra.mrb[2].mxu0 %vm70_vm0, %v30_v19  ;;  %803 = vmatprep.mubr.msk.f32.mxu1 %vm70_vm0, %v47_v20 }
  0x12   :  { %835 = vmatprep.mubr.msk.f32.mxu0 %vm70_vm0, %v31_v21 }
  0x14   :  { %804 = vmatmul.mubr.msk.f32.gmra.mrb[4].mxu1 %vm70_vm0, %v48_v22 }
  0x15   :  { %836 = vmatmul.mubr.msk.f32.gmra.mrb[4].mxu0 %vm70_vm0, %v32_v23  ;;  %806 = vmatprep.mubr.msk.f32.mxu1 %vm70_vm0, %v49_v24 }
  0x16   :  { %838 = vmatprep.mubr.msk.f32.mxu0 %vm70_vm0, %v33_v25 }
  0x18   :  { %807 = vmatmul.mubr.msk.f32.gmra.mrb[6].mxu1 %vm70_vm0, %v50_v26 }
  0x19   :  { %839 = vmatmul.mubr.msk.f32.gmra.mrb[6].mxu0 %vm70_vm0, %v34_v27  ;;  %809 = vmatprep.mubr.msk.f32.mxu1 %vm70_vm0, %v51_v28 }
  0x1a   :  { %841 = vmatprep.mubr.msk.f32.mxu0 %vm70_vm0, %v35_v29 }
  0x1c   :  { %810 = vmatmul.mubr.msk.f32.gmra.mrb[8].mxu1 %vm70_vm0, %v52_v30 }
  0x1d   :  { %842 = vmatmul.mubr.msk.f32.gmra.mrb[8].mxu0 %vm70_vm0, %v36_v31  ;;  %812 = vmatprep.mubr.msk.f32.mxu1 %vm70_vm0, %v53_v32 }
  0x1e   :  { %844 = vmatprep.mubr.msk.f32.mxu0 %vm70_vm0, %v37_v33 }
  0x20   :  { %813 = vmatmul.mubr.msk.f32.gmra.mrb[10].mxu1 %vm70_vm0, %v54_v34 }
  0x21   :  { %845 = vmatmul.mubr.msk.f32.gmra.mrb[10].mxu0 %vm70_vm0, %v38_v35  ;;  %815 = vmatprep.mubr.msk.f32.mxu1 %vm70_vm0, %v55_v36 }
  0x22   :  { %847 = vmatprep.mubr.msk.f32.mxu0 %vm70_vm0, %v39_v37 }
  0x24   :  { %816 = vmatmul.mubr.msk.f32.gmra.mrb[12].mxu1 %vm70_vm0, %v56_v38 }
  0x25   :  { %848 = vmatmul.mubr.msk.f32.gmra.mrb[12].mxu0 %vm70_vm0, %v40_v39  ;;  %818 = vmatprep.mubr.msk.f32.mxu1 %vm70_vm0, %v57_v40 }
  0x26   :  { %850 = vmatprep.mubr.msk.f32.mxu0 %vm70_vm0, %v41_v41 }
  0x28   :  { %819 = vmatmul.mubr.msk.f32.gmra.mrb[14].mxu1 %vm70_vm0, %v58_v42 }
  0x29   :  { %851 = vmatmul.mubr.msk.f32.gmra.mrb[14].mxu0 %vm70_vm0, %v42_v43 }
  0xdf   :  { %v799_v44 = vpop.f32.mrb[0].mxu1 }
  0xe0   :  { %v831_v46 = vpop.f32.mrb[0].mxu0  ;;  %v185_v47 = vpop.f32.mrb[1].mxu1 }
  0xe1   :  { %v384_v48 = vadd.f32 %v831_v46, %v799_v44  ;;  %v378_v49 = vpop.f32.mrb[1].mxu0 }
  0xe2   :  { %v379_v50 = vadd.f32 %v378_v49, %v185_v47 }
  0xe3   :  { %v464_v51 = vadd.f32 %v1080_v45, %v384_v48  ;;  %v802_v52 = vpop.f32.mrb[2].mxu1 }
  0xe4   :  { %v463_v53 = vadd.f32 %v1080_v45, %v379_v50  ;;  %v834_v54 = vpop.f32.mrb[2].mxu0  ;;  %v195_v55 = vpop.f32.mrb[3].mxu1 }
  0xe5   :  { %v480_v57 = vmax.f32 %v464_v51, 0.0  ;;  %v394_v58 = vadd.f32 %v834_v54, %v802_v52  ;;  %v388_v59 = vpop.f32.mrb[3].mxu0 }
  0xe6   :  { %v479_v60 = vmax.f32 %v463_v53, 0.0  ;;  %v389_v61 = vadd.f32 %v388_v59, %v195_v55 }
  0xe7   :  { %v466_v62 = vadd.f32 %v1080_v45, %v394_v58  ;;  %v805_v63 = vpop.f32.mrb[4].mxu1  ;;  %v502_v0 = vmul.f32 %v1087_v56, %v480_v57 }
  0xe8   :  { %v465_v1 = vadd.f32 %v1080_v45, %v389_v61  ;;  %v837_v2 = vpop.f32.mrb[4].mxu0  ;;  %v205_v3 = vpop.f32.mrb[5].mxu1  ;;  %v501_v4 = vmul.f32 %v1087_v56, %v479_v60 }
  0xe9   :  { %v482_v5 = vmax.f32 %v466_v62, 0.0  ;;  %v404_v6 = vadd.f32 %v837_v2, %v805_v63  ;;  %v398_v7 = vpop.f32.mrb[5].mxu0  ;;  %v520_v8 = vsel %vm70_vm0, %v502_v0, 0.0 }
  0xea   :  { %v481_v9 = vmax.f32 %v465_v1, 0.0  ;;  %v399_v10 = vadd.f32 %v398_v7, %v205_v3  ;;  %521 = vadd.xlane.f32.xlu0 %v520_v8  ;;  %v517_v17 = vsel %vm70_vm0, %v501_v4, 0.0 }
  0xeb   :  { %v468_v11 = vadd.f32 %v1080_v45, %v404_v6  ;;  %v808_v12 = vpop.f32.mrb[6].mxu1  ;;  %v504_v13 = vmul.f32 %v1087_v56, %v482_v5 }
  0xec   :  { %v467_v14 = vadd.f32 %v1080_v45, %v399_v10  ;;  %v840_v15 = vpop.f32.mrb[6].mxu0  ;;  %v215_v16 = vpop.f32.mrb[7].mxu1  ;;  %v503_v22 = vmul.f32 %v1087_v56, %v481_v9 }
  0xed   :  { %v484_v18 = vmax.f32 %v468_v11, 0.0  ;;  %v414_v19 = vadd.f32 %v840_v15, %v808_v12  ;;  %v408_v20 = vpop.f32.mrb[7].mxu0  ;;  %v526_v21 = vsel %vm70_vm0, %v504_v13, 0.0 }
  0xee   :  { %v483_v23 = vmax.f32 %v467_v14, 0.0  ;;  %v409_v24 = vadd.f32 %v408_v20, %v215_v16  ;;  %527 = vadd.xlane.f32.xlu1 %v526_v21  ;;  %518 = vadd.xlane.f32.xlu0 %v517_v17  ;;  %v523_v34 = vsel %vm70_vm0, %v503_v22, 0.0 }
  0xef   :  { %v470_v25 = vadd.f32 %v1080_v45, %v414_v19  ;;  %v811_v26 = vpop.f32.mrb[8].mxu1  ;;  %v506_v35 = vmul.f32 %v1087_v56, %v484_v18 }
  0xf0   :  { %v469_v27 = vadd.f32 %v1080_v45, %v409_v24  ;;  %v843_v28 = vpop.f32.mrb[8].mxu0  ;;  %v225_v29 = vpop.f32.mrb[9].mxu1  ;;  %v505_v30 = vmul.f32 %v1087_v56, %v483_v23 }
  0xf1   :  { %v486_v31 = vmax.f32 %v470_v25, 0.0  ;;  %v424_v32 = vadd.f32 %v843_v28, %v811_v26  ;;  %v418_v33 = vpop.f32.mrb[9].mxu0  ;;  %v532_v49 = vsel %vm70_vm0, %v506_v35, 0.0 }
  0xf2   :  { %v485_v36 = vmax.f32 %v469_v27, 0.0  ;;  %v419_v37 = vadd.f32 %v418_v33, %v225_v29  ;;  %524 = vadd.xlane.f32.xlu1 %v523_v34  ;;  %v529_v38 = vsel %vm70_vm0, %v505_v30, 0.0 }
  0xf3   :  { %v472_v39 = vadd.f32 %v1080_v45, %v424_v32  ;;  %530 = vadd.xlane.f32.xlu0 %v529_v38  ;;  %v814_v40 = vpop.f32.mrb[10].mxu1  ;;  %v508_v50 = vmul.f32 %v1087_v56, %v486_v31  ;;  %v598_v31 = vlaneseq }
  0xf4   :  { %v471_v41 = vadd.f32 %v1080_v45, %v419_v37  ;;  %v846_v42 = vpop.f32.mrb[10].mxu0  ;;  %v235_v43 = vpop.f32.mrb[11].mxu1  ;;  %v507_v44 = vmul.f32 %v1087_v56, %v485_v36  ;;  %v1143_v36 = vstv %s1202_s6 }
  0xf5   :  { %v488_v46 = vmax.f32 %v472_v39, 0.0  ;;  %v434_v47 = vadd.f32 %v846_v42, %v814_v40  ;;  %v428_v48 = vpop.f32.mrb[11].mxu0  ;;  %v538_v0 = vsel %vm70_vm0, %v508_v50, 0.0  ;;  %v1135_v32 = vand.u32 127, %v598_v31 }
  0xf6   :  { %v487_v51 = vmax.f32 %v471_v41, 0.0  ;;  %v429_v52 = vadd.f32 %v428_v48, %v235_v43  ;;  %533 = vadd.xlane.f32.xlu1 %v532_v49  ;;  %v535_v53 = vsel %vm70_vm0, %v507_v44, 0.0  ;;  %v1137_v34 = vshrl.u32 %v598_v31, 7 }
  0xf7   :  { %v474_v54 = vadd.f32 %v1080_v45, %v434_v47  ;;  %536 = vadd.xlane.f32.xlu0 %v535_v53  ;;  %v817_v55 = vpop.f32.mrb[12].mxu1  ;;  %v510_v1 = vmul.f32 %v1087_v56, %v488_v46  ;;  %v604_v35 = vadd.s32 4294967288, %v1135_v32  ;;  %v618_v37 = vadd.s32 4294967272, %v1135_v32 }
  0xf8   :  { %v473_v57 = vadd.f32 %v1080_v45, %v429_v52  ;;  %v849_v58 = vpop.f32.mrb[12].mxu0  ;;  %v245_v59 = vpop.f32.mrb[13].mxu1  ;;  %v509_v60 = vmul.f32 %v1087_v56, %v487_v51  ;;  %v602_v39 = vsub.s32 %v1135_v32, %v1137_v34  ;;  %v625_v41 = vadd.s32 4294967264, %v1135_v32 }
  0xf9   :  { %v490_v61 = vmax.f32 %v474_v54, 0.0  ;;  %v444_v62 = vadd.f32 %v849_v58, %v817_v55  ;;  %v438_v63 = vpop.f32.mrb[13].mxu0  ;;  %v544_v14 = vsel %vm70_vm0, %v510_v1, 0.0  ;;  %v607_v43 = vsub.s32 %v604_v35, %v1137_v34 }
  0xfa   :  { %v489_v2 = vmax.f32 %v473_v57, 0.0  ;;  %v439_v3 = vadd.f32 %v438_v63, %v245_v59  ;;  %539 = vadd.xlane.f32.xlu1 %v538_v0  ;;  %v541_v4 = vsel %vm70_vm0, %v509_v60, 0.0  ;;  %v632_v46 = vadd.s32 4294967256, %v1135_v32 }
  0xfb   :  { %v476_v5 = vadd.f32 %v1080_v45, %v444_v62  ;;  %542 = vadd.xlane.f32.xlu0 %v541_v4  ;;  %v820_v6 = vpop.f32.mrb[14].mxu1  ;;  %v512_v15 = vmul.f32 %v1087_v56, %v490_v61  ;;  %v639_v48 = vadd.s32 4294967248, %v1135_v32  ;;  %v621_v49 = vsub.s32 %v618_v37, %v1137_v34 }
  0xfc   :  { %v475_v7 = vadd.f32 %v1080_v45, %v439_v3  ;;  %v852_v8 = vpop.f32.mrb[14].mxu0  ;;  %v255_v9 = vpop.f32.mrb[15].mxu1  ;;  %v511_v10 = vmul.f32 %v1087_v56, %v489_v2  ;;  %v628_v53 = vsub.s32 %v625_v41, %v1137_v34  ;;  %v635_v59 = vsub.s32 %v632_v46, %v1137_v34 }
  0xfd   :  { %v492_v11 = vmax.f32 %v476_v5, 0.0  ;;  %v454_v12 = vadd.f32 %v852_v8, %v820_v6  ;;  %v448_v13 = vpop.f32.mrb[15].mxu0  ;;  %v550_v23 = vsel %vm70_vm0, %v512_v15, 0.0  ;;  %v642_v61 = vsub.s32 %v639_v48, %v1137_v34 }
  0xfe   :  { %v491_v16 = vmax.f32 %v475_v7, 0.0  ;;  %v449_v17 = vadd.f32 %v448_v13, %v255_v9  ;;  %545 = vadd.xlane.f32.xlu1 %v544_v14  ;;  %v547_v18 = vsel %vm70_vm0, %v511_v10, 0.0  ;;  %v646_v62 = vadd.s32 4294967240, %v1135_v32 }
  0xff   :  { %v478_v19 = vadd.f32 %v1080_v45, %v454_v12  ;;  %548 = vadd.xlane.f32.xlu0 %v547_v18  ;;  %v514_v24 = vmul.f32 %v1087_v56, %v492_v11  ;;  %v653_v3 = vadd.s32 4294967232, %v1135_v32  ;;  %v660_v12 = vadd.s32 4294967224, %v1135_v32 }
 0x100   :  { %v477_v20 = vadd.f32 %v1080_v45, %v449_v17  ;;  %v513_v21 = vmul.f32 %v1087_v56, %v491_v16  ;;  %v649_v11 = vsub.s32 %v646_v62, %v1137_v34  ;;  %v667_v16 = vadd.s32 4294967216, %v1135_v32 }
 0x101   :  { %v494_v22 = vmax.f32 %v478_v19, 0.0  ;;  %v556_v28 = vsel %vm70_vm0, %v514_v24, 0.0  ;;  %v656_v15 = vsub.s32 %v653_v3, %v1137_v34  ;;  %v695_v41 = vadd.s32 4294967184, %v1135_v32 }
 0x102   :  { %v493_v25 = vmax.f32 %v477_v20, 0.0  ;;  %551 = vadd.xlane.f32.xlu1 %v550_v23  ;;  %v553_v26 = vsel %vm70_vm0, %v513_v21, 0.0  ;;  %v674_v23 = vadd.s32 4294967208, %v1135_v32 }
 0x103   :  { %554 = vadd.xlane.f32.xlu0 %v553_v26  ;;  %v516_v29 = vmul.f32 %v1087_v56, %v494_v22  ;;  %v663_v22 = vsub.s32 %v660_v12, %v1137_v34 }
 0x104   :  { %v515_v27 = vmul.f32 %v1087_v56, %v493_v25  ;;  %v611_v56 = vadd.s32 4294967280, %v1135_v32  ;;  %v677_v35 = vsub.s32 %v674_v23, %v1137_v34 }
 0x105   :  { %v562_v30 = vsel %vm70_vm0, %v516_v29, 0.0 }
 0x106   :  { %557 = vadd.xlane.f32.xlu1 %v556_v28  ;;  %v559_v45 = vsel %vm70_vm0, %v515_v27, 0.0  ;;  %v614_v47 = vsub.s32 %v611_v56, %v1137_v34  ;;  %v670_v27 = vsub.s32 %v667_v16, %v1137_v34  ;;  %v681_v28 = vadd.s32 4294967200, %v1135_v32 }
 0x107   :  { %560 = vadd.xlane.f32.xlu0 %v559_v45  ;;  %v688_v56 = vadd.s32 4294967192, %v1135_v32 }
 0x109   :  { %v691_v48 = vsub.s32 %v688_v56, %v1137_v34 }
 0x10a   :  { %563 = vadd.xlane.f32.xlu1 %v562_v30 }
 0x177   :  { %v522_v33 = vpop.xlane.xlu0 %521 }
 0x178   :  { %v567_v44 = vadd.f32 %v1143_v36, %v522_v33 }
 0x17a   :  { %v608_v57 = vrot.slane %v567_v44, %v607_v43 }
 0x17b   :  { %v528_v38 = vpop.xlane.xlu1 %527  ;;  %v519_v40 = vpop.xlane.xlu0 %518 }
 0x17c   :  { %v566_v42 = vadd.f32 %v1143_v36, %v519_v40  ;;  %v569_v50 = vadd.f32 %v1143_v36, %v528_v38  ;;  %v684_v40 = vsub.s32 %v681_v28, %v1137_v34 }
 0x17e   :  { %v603_v51 = vrot.slane %v566_v42, %v602_v39  ;;  %v622_v63 = vrot.slane %v569_v50, %v621_v49  ;;  %v702_v49 = vadd.s32 4294967176, %v1135_v32 }
 0x17f   :  { %v525_v52 = vpop.xlane.xlu1 %524 }
 0x180   :  { %v568_v54 = vadd.f32 %v1143_v36, %v525_v52  ;;  %v531_v55 = vpop.xlane.xlu0 %530  ;;  %v610_v0 = vsel %vm609_vm1, %v608_v57, %v603_v51 }
 0x181   :  { %v570_v58 = vadd.f32 %v1143_v36, %v531_v55 }
 0x182   :  { %v615_v60 = vrot.slane %v568_v54, %v614_v47 }
 0x183   :  { %v629_v1 = vrot.slane %v570_v58, %v628_v53  ;;  %v534_v2 = vpop.xlane.xlu1 %533  ;;  %v698_v53 = vsub.s32 %v695_v41, %v1137_v34 }
 0x184   :  { %v617_v4 = vsel %vm616_vm2, %v615_v60, %v610_v0  ;;  %v571_v5 = vadd.f32 %v1143_v36, %v534_v2  ;;  %v537_v6 = vpop.xlane.xlu0 %536  ;;  %v705_v60 = vsub.s32 %v702_v49, %v1137_v34 }
 0x185   :  { %v624_v7 = vsel %vm623_vm3, %v622_v63, %v617_v4  ;;  %v572_v8 = vadd.f32 %v1143_v36, %v537_v6 }
 0x186   :  { %v631_v9 = vsel %vm630_vm4, %v629_v1, %v624_v7  ;;  %v636_v10 = vrot.slane %v571_v5, %v635_v59 }
 0x187   :  { %v643_v13 = vrot.slane %v572_v8, %v642_v61  ;;  %v540_v14 = vpop.xlane.xlu1 %539 }
 0x188   :  { %v638_v17 = vsel %vm637_vm5, %v636_v10, %v631_v9  ;;  %v573_v18 = vadd.f32 %v1143_v36, %v540_v14  ;;  %v543_v19 = vpop.xlane.xlu0 %542 }
 0x189   :  { %v574_v20 = vadd.f32 %v1143_v36, %v543_v19  ;;  %v645_v24 = vsel %vm644_vm6, %v643_v13, %v638_v17 }
 0x18a   :  { %v650_v21 = vrot.slane %v573_v18, %v649_v11 }
 0x18b   :  { %v657_v25 = vrot.slane %v574_v20, %v656_v15  ;;  %v546_v26 = vpop.xlane.xlu1 %545 }
 0x18c   :  { %v652_v29 = vsel %vm651_vm7, %v650_v21, %v645_v24  ;;  %v575_v45 = vadd.f32 %v1143_v36, %v546_v26  ;;  %v549_v30 = vpop.xlane.xlu0 %548 }
 0x18d   :  { %v576_v31 = vadd.f32 %v1143_v36, %v549_v30  ;;  %v659_v37 = vsel %vm658_vm8, %v657_v25, %v652_v29 }
 0x18e   :  { %v664_v33 = vrot.slane %v575_v45, %v663_v22 }
 0x18f   :  { %v671_v38 = vrot.slane %v576_v31, %v670_v27  ;;  %v552_v39 = vpop.xlane.xlu1 %551 }
 0x190   :  { %v666_v42 = vsel %vm665_vm9, %v664_v33, %v659_v37  ;;  %v577_v43 = vadd.f32 %v1143_v36, %v552_v39  ;;  %v555_v44 = vpop.xlane.xlu0 %554 }
 0x191   :  { %v578_v46 = vadd.f32 %v1143_v36, %v555_v44  ;;  %v673_v50 = vsel %vm672_vm10, %v671_v38, %v666_v42 }
 0x192   :  { %v678_v47 = vrot.slane %v577_v43, %v677_v35 }
 0x193   :  { %v685_v51 = vrot.slane %v578_v46, %v684_v40  ;;  %v558_v52 = vpop.xlane.xlu1 %557 }
 0x194   :  { %v680_v54 = vsel %vm679_vm11, %v678_v47, %v673_v50  ;;  %v579_v55 = vadd.f32 %v1143_v36, %v558_v52  ;;  %v561_v57 = vpop.xlane.xlu0 %560 }
 0x195   :  { %v580_v58 = vadd.f32 %v1143_v36, %v561_v57  ;;  %v687_v61 = vsel %vm686_vm12, %v685_v51, %v680_v54 }
 0x196   :  { %v692_v59 = vrot.slane %v579_v55, %v691_v48 }
 0x197   :  { %v699_v62 = vrot.slane %v580_v58, %v698_v53  ;;  %v564_v63 = vpop.xlane.xlu1 %563 }
 0x198   :  { %v694_v32 = vsel %vm693_vm13, %v692_v59, %v687_v61  ;;  %v581_v0 = vadd.f32 %v1143_v36, %v564_v63 }
 0x199   :  { %v701_v2 = vsel %vm700_vm14, %v699_v62, %v694_v32 }
 0x19a   :  { %v706_v1 = vrot.slane %v581_v0, %v705_v60 }
 0x19c   :  { %v708_v3 = vsel %vm707_vm15, %v706_v1, %v701_v2 }
 0x19d   :  { %710 = vst [vmem:[%s1203_s7] sm:$0x1] %v708_v3 }

</bundles_post_ra>
